<compile_context>
chip_gen: v5e
topology: v5e:2x2
jax: 0.10.0
libtpu: 0.0.40
codegen_flags: <defaults>
</compile_context>

<pallas_src>
import functools
import math

import jax
import jax.numpy as jnp
from jax.experimental import pallas as pl
from jax.experimental.pallas import tpu as pltpu


def _pad_to(x: int, m: int) -> int:
    return ((x + m - 1) // m) * m


def _vmem_limit_bytes() -> int:
    """Generation-aware scoped-VMEM limit (~75% of physical per-core VMEM)."""
    cap = 64 << 20  # conservative fallback = v7x per-TensorCore VMEM
    try:
        info = pltpu.get_tpu_info()
        cap = int(info.vmem_capacity_bytes)
        # v7x has 64 MiB VMEM per TensorCore (2 TCs/chip); if the query reports
        # per-chip capacity, clamp so the scoped limit never exceeds physical.
        name = str(getattr(info, "chip_version", "")).lower()
        if "7" in name:
            cap = min(cap, 64 << 20)
    except Exception:
        pass
    cap = min(cap, 128 << 20)  # v5e/v6e per-TC VMEM
    return (cap * 3) // 4


def _choose_tile(n: int) -> int:
    """Largest square tile (multiple of 128) with <=12.5% zero-padding waste."""
    n128 = _pad_to(max(n, 128), 128)
    for t in (1024, 512, 256, 128):
        if t <= n128 and ((-n128) % t) * 8 <= n128:
            return t
    return 128


# ---------------------------------------------------------------------------
# Resident-A kernel: A is DMA'd from HBM exactly once into a single VMEM
# scratch (no double-buffering), H/H0 live in VMEM, all propagation steps are
# unrolled inside one kernel.
# ---------------------------------------------------------------------------
def _pagerank_resident_kernel(a_hbm, h0_ref, out_ref, a_vmem, *, alpha: float,
                              n_propagation: int):
    pltpu.sync_copy(a_hbm, a_vmem)            # one HBM->VMEM copy of A
    a = a_vmem[...]
    h0 = h0_ref[...]                          # f32
    h = h0
    for _ in range(n_propagation):
        # bf16 x bf16 (or f32 x f32) on the MXU with f32 accumulation.
        prop = jnp.dot(a, h.astype(a.dtype), preferred_element_type=jnp.float32)
        h = (1.0 - alpha) * prop + alpha * h0
    out_ref[...] = h


# ---------------------------------------------------------------------------
# Tiled kernel: one propagation step, grid = (row blocks, K blocks).
# Accumulates A[i, k] @ H[k] directly into the k-invariant f32 output block
# (no scratch), finalized with (1 - alpha) * acc + alpha * H0[i] on the last
# K block.
# ---------------------------------------------------------------------------
def _pagerank_step_kernel(a_ref, h_ref, h0_ref, out_ref, *, alpha: float):
    k = pl.program_id(1)

    @pl.when(k == 0)
    def _():
        out_ref[...] = jnp.zeros_like(out_ref)

    out_ref[...] += jnp.dot(a_ref[...], h_ref[...],
                            preferred_element_type=jnp.float32)

    @pl.when(k == pl.num_programs(1) - 1)
    def _():
        out_ref[...] = (1.0 - alpha) * out_ref[...] + alpha * h0_ref[...]


def _pagerank_step(a, h_op, h0, *, alpha: float, tm: int, tk: int,
                   vmem_limit: int):
    n_pad, c_pad = h0.shape
    grid = (n_pad // tm, n_pad // tk)
    a_item = a.dtype.itemsize
    h_item = h_op.dtype.itemsize
    return pl.pallas_call(
        functools.partial(_pagerank_step_kernel, alpha=alpha),
        out_shape=jax.ShapeDtypeStruct((n_pad, c_pad), jnp.float32),
        grid_spec=pltpu.PrefetchScalarGridSpec(
            num_scalar_prefetch=0,
            grid=grid,
            in_specs=[
                pl.BlockSpec((tm, tk), lambda i, k: (i, k)),       # A tile
                pl.BlockSpec((tk, c_pad), lambda i, k: (k, 0)),    # H tile (dot operand)
                pl.BlockSpec((tm, c_pad), lambda i, k: (i, 0)),    # H0 tile (finalize)
            ],
            out_specs=pl.BlockSpec((tm, c_pad), lambda i, k: (i, 0)),
        ),
        compiler_params=pltpu.CompilerParams(
            dimension_semantics=("parallel", "arbitrary"),
            vmem_limit_bytes=vmem_limit,
        ),
        cost_estimate=pl.CostEstimate(
            flops=2 * n_pad * n_pad * c_pad,
            transcendentals=0,
            bytes_accessed=(a_item * n_pad * n_pad
                            + h_item * (n_pad // tm) * n_pad * c_pad
                            + 4 * 2 * n_pad * c_pad),
        ),
    )(a, h_op, h0)


# ---------------------------------------------------------------------------
# Public wrapper.
# ---------------------------------------------------------------------------
def power_iteration_pagerank(logits: jax.Array,
                             a_hat: jax.Array,
                             *,
                             alpha: float = 0.15,
                             n_propagation: int = 5,
                             use_bf16_a: bool = True,
                             force_tiled: bool = False,
                             tm: int | None = None,
                             tk: int | None = None) -> jax.Array:
    """Pallas PPNP propagation. logits: [N, C], a_hat: [N, N] dense row-stochastic."""
    n, c = logits.shape
    assert a_hat.shape == (n, n)
    out_dtype = logits.dtype
    alpha = float(alpha)
    n_propagation = int(n_propagation)

    vmem_limit = _vmem_limit_bytes()
    c_pad = _pad_to(max(c, 128), 128)  # lane-dense class dimension

    a_dtype = jnp.bfloat16 if use_bf16_a else jnp.float32
    a = a_hat.astype(a_dtype)
    h0 = logits.astype(jnp.float32)
    if c_pad != c:
        h0 = jnp.pad(h0, ((0, 0), (0, c_pad - c)))

    a_bytes = n * n * a.dtype.itemsize
    h_bytes = n * c_pad * 4
    # A is held in a single VMEM copy (sync_copy into scratch, no double
    # buffering); charge ~8 H-sized f32 buffers for H0/out + unrolled
    # intermediates, with ~15% headroom.
    resident_fits = (a_bytes + 8 * h_bytes) <= (vmem_limit * 17) // 20

    if resident_fits and not force_tiled:
        kernel = functools.partial(_pagerank_resident_kernel,
                                   alpha=alpha, n_propagation=n_propagation)
        out = pl.pallas_call(
            kernel,
            out_shape=jax.ShapeDtypeStruct((n, c_pad), jnp.float32),
            grid_spec=pltpu.PrefetchScalarGridSpec(
                num_scalar_prefetch=0,
                grid=(),
                in_specs=[
                    pl.BlockSpec(memory_space=pl.ANY),           # A stays in HBM; one DMA
                    pl.BlockSpec((n, c_pad), lambda: (0, 0)),    # H0, full block
                ],
                out_specs=pl.BlockSpec((n, c_pad), lambda: (0, 0)),
                scratch_shapes=[pltpu.VMEM((n, n), a.dtype)],    # single copy of A
            ),
            compiler_params=pltpu.CompilerParams(vmem_limit_bytes=vmem_limit),
            cost_estimate=pl.CostEstimate(
                flops=2 * n_propagation * n * n * c_pad,
                transcendentals=0,
                bytes_accessed=a_bytes + 2 * h_bytes,
            ),
        )(a, h0)
        return out[:, :c].astype(out_dtype)

    # Tiled / streamed path (A too big to keep resident, or forced for testing).
    if tm is None or tk is None:
        t = _choose_tile(n)
        tm = tm if tm is not None else t
        tk = tk if tk is not None else t
    base = math.lcm(tm, tk)
    n_pad = _pad_to(n, base)
    if n_pad != n:
        a = jnp.pad(a, ((0, n_pad - n), (0, n_pad - n)))
        h0 = jnp.pad(h0, ((0, n_pad - n), (0, 0)))

    h = h0
    for _ in range(n_propagation):
        h_op = h.astype(a.dtype)   # bf16 dot operand halves H's HBM traffic
        h = _pagerank_step(a, h_op, h0, alpha=alpha, tm=tm, tk=tk,
                           vmem_limit=vmem_limit)
    return h[:n, :c].astype(out_dtype)


def _reference(logits, a_hat, alpha=0.15, n_propagation=5,
               a_dtype=jnp.float32):
    """Pure-JAX reference.  a_dtype=bf16 mimics the kernel's quantization."""
    a = a_hat.astype(a_dtype).astype(jnp.float32)
    h0 = logits.astype(jnp.float32)
    h = h0
    for _ in range(n_propagation):
        h_op = h.astype(a_dtype).astype(jnp.float32)
        prop = jnp.dot(a, h_op, precision=jax.lax.Precision.HIGHEST,
                       preferred_element_type=jnp.float32)
        h = (1.0 - alpha) * prop + alpha * h0
    return h


if __name__ == "__main__":
    def make_inputs(n, c, key):
        k_a, k_h = jax.random.split(key)
        # Deterministic "sparse" adjacency: random mask + self loops, row-normalized.
        raw = jax.random.uniform(k_a, (n, n), dtype=jnp.float32)
        mask = (raw > 0.9).astype(jnp.float32)              # ~10% density
        adj = mask + jnp.eye(n, dtype=jnp.float32)          # add self-loops
        a_hat = adj / jnp.sum(adj, axis=1, keepdims=True)   # row-stochastic
        logits = jax.random.normal(k_h, (n, c), dtype=jnp.float32)
        return logits, a_hat

    key = jax.random.PRNGKey(0)

    # 1) Resident path, bf16 A (default fast path).
    logits, a_hat = make_inputs(128, 32, key)
    out = jax.block_until_ready(
        power_iteration_pagerank(logits, a_hat, alpha=0.15, n_propagation=5))
    ref_q = _reference(logits, a_hat, a_dtype=jnp.bfloat16)
    ref_f = _reference(logits, a_hat)
    assert out.shape == (128, 32)
    assert jnp.allclose(out, ref_q, atol=2e-3, rtol=2e-3), "resident bf16 mismatch"
    assert jnp.allclose(out, ref_f, atol=1e-1, rtol=1e-1), "resident bf16 drift vs f32"

    # 2) Resident path, f32 A (exact-parity path).
    out_f32 = jax.block_until_ready(
        power_iteration_pagerank(logits, a_hat, use_bf16_a=False))
    assert jnp.allclose(out_f32, ref_f, atol=1e-3, rtol=1e-3), "resident f32 mismatch"

    # 3) Tiled / streamed path (forced), f32 A, N not a tile multiple
    # (exercises row-parallel + accumulate-into-out_ref + zero-padding).
    logits2, a_hat2 = make_inputs(200, 32, key)
    out2 = jax.block_until_ready(
        power_iteration_pagerank(logits2, a_hat2, use_bf16_a=False,
                                 force_tiled=True, tm=128, tk=128))
    ref2_f = _reference(logits2, a_hat2)
    assert out2.shape == (200, 32)
    assert jnp.allclose(out2, ref2_f, atol=1e-3, rtol=1e-3), "tiled f32 mismatch"

    # 4) Tiled / streamed path (forced), bf16 A (default fast path).
    out2b = jax.block_until_ready(
        power_iteration_pagerank(logits2, a_hat2,
                                 force_tiled=True, tm=128, tk=128))
    ref2_q = _reference(logits2, a_hat2, a_dtype=jnp.bfloat16)
    assert jnp.allclose(out2b, ref2_q, atol=2e-3, rtol=2e-3), "tiled bf16 mismatch"

    print("KERNEL_OK")
</pallas_src>

<mosaic_0001>
module attributes {stable_mosaic.version = 11 : i64} {
  func.func @_pagerank_resident_kernel(%arg0: memref<128x128xbf16, #tpu.memory_space<any>>, %arg1: memref<128x128xf32, #tpu.memory_space<vmem>>, %arg2: memref<128x128xf32, #tpu.memory_space<vmem>>, %arg3: memref<128x128xbf16, #tpu.memory_space<vmem>>) attributes {dimension_semantics = [], scalar_prefetch = 0 : i64, scratch_operands = 1 : i64, tpu.core_type = #tpu.core_type<tc>} {
    "tpu.region"() ({
      %38 = tpu.sem_alloc : memref<!tpu.dma_semaphore, #tpu.memory_space<semaphore_mem>>
      tpu.enqueue_dma source(%arg0 : memref<128x128xbf16, #tpu.memory_space<any>>) target(%arg3 : memref<128x128xbf16, #tpu.memory_space<vmem>>) target_semaphore(%38 : memref<!tpu.dma_semaphore, #tpu.memory_space<semaphore_mem>>)
      tpu.wait_dma2 semaphore(%38 : memref<!tpu.dma_semaphore, #tpu.memory_space<semaphore_mem>>) src(%arg0 : memref<128x128xbf16, #tpu.memory_space<any>>) dst(%arg3 : memref<128x128xbf16, #tpu.memory_space<vmem>>)
      tpu.yield
    }) : () -> ()
    %c0 = arith.constant 0 : index
    %c0_0 = arith.constant 0 : index
    %0 = vector.load %arg3[%c0, %c0_0] : memref<128x128xbf16, #tpu.memory_space<vmem>>, vector<128x128xbf16>
    %c0_1 = arith.constant 0 : index
    %c0_2 = arith.constant 0 : index
    %1 = vector.load %arg1[%c0_1, %c0_2] : memref<128x128xf32, #tpu.memory_space<vmem>>, vector<128x128xf32>
    %2 = arith.truncf %1 : vector<128x128xf32> to vector<128x128xbf16>
    %cst = arith.constant dense<0.000000e+00> : vector<128x128xf32>
    %3 = tpu.matmul %0, %2, %cst {dimension_numbers = #tpu.dot_dimension_numbers<[1], [0], [0], [1], [0, 0, 1, 1], [], []>} : vector<128x128xbf16>, vector<128x128xbf16>, vector<128x128xf32> -> vector<128x128xf32>
    %cst_3 = arith.constant 8.500000e-01 : f32
    %4 = vector.broadcast %cst_3 : f32 to vector<128x128xf32>
    %5 = arith.mulf %4, %3 : vector<128x128xf32>
    %cst_4 = arith.constant 1.500000e-01 : f32
    %6 = vector.broadcast %cst_4 : f32 to vector<128x128xf32>
    %7 = arith.mulf %6, %1 : vector<128x128xf32>
    %8 = arith.addf %5, %7 : vector<128x128xf32>
    %9 = arith.truncf %8 : vector<128x128xf32> to vector<128x128xbf16>
    %cst_5 = arith.constant dense<0.000000e+00> : vector<128x128xf32>
    %10 = tpu.matmul %0, %9, %cst_5 {dimension_numbers = #tpu.dot_dimension_numbers<[1], [0], [0], [1], [0, 0, 1, 1], [], []>} : vector<128x128xbf16>, vector<128x128xbf16>, vector<128x128xf32> -> vector<128x128xf32>
    %cst_6 = arith.constant 8.500000e-01 : f32
    %11 = vector.broadcast %cst_6 : f32 to vector<128x128xf32>
    %12 = arith.mulf %11, %10 : vector<128x128xf32>
    %cst_7 = arith.constant 1.500000e-01 : f32
    %13 = vector.broadcast %cst_7 : f32 to vector<128x128xf32>
    %14 = arith.mulf %13, %1 : vector<128x128xf32>
    %15 = arith.addf %12, %14 : vector<128x128xf32>
    %16 = arith.truncf %15 : vector<128x128xf32> to vector<128x128xbf16>
    %cst_8 = arith.constant dense<0.000000e+00> : vector<128x128xf32>
    %17 = tpu.matmul %0, %16, %cst_8 {dimension_numbers = #tpu.dot_dimension_numbers<[1], [0], [0], [1], [0, 0, 1, 1], [], []>} : vector<128x128xbf16>, vector<128x128xbf16>, vector<128x128xf32> -> vector<128x128xf32>
    %cst_9 = arith.constant 8.500000e-01 : f32
    %18 = vector.broadcast %cst_9 : f32 to vector<128x128xf32>
    %19 = arith.mulf %18, %17 : vector<128x128xf32>
    %cst_10 = arith.constant 1.500000e-01 : f32
    %20 = vector.broadcast %cst_10 : f32 to vector<128x128xf32>
    %21 = arith.mulf %20, %1 : vector<128x128xf32>
    %22 = arith.addf %19, %21 : vector<128x128xf32>
    %23 = arith.truncf %22 : vector<128x128xf32> to vector<128x128xbf16>
    %cst_11 = arith.constant dense<0.000000e+00> : vector<128x128xf32>
    %24 = tpu.matmul %0, %23, %cst_11 {dimension_numbers = #tpu.dot_dimension_numbers<[1], [0], [0], [1], [0, 0, 1, 1], [], []>} : vector<128x128xbf16>, vector<128x128xbf16>, vector<128x128xf32> -> vector<128x128xf32>
    %cst_12 = arith.constant 8.500000e-01 : f32
    %25 = vector.broadcast %cst_12 : f32 to vector<128x128xf32>
    %26 = arith.mulf %25, %24 : vector<128x128xf32>
    %cst_13 = arith.constant 1.500000e-01 : f32
    %27 = vector.broadcast %cst_13 : f32 to vector<128x128xf32>
    %28 = arith.mulf %27, %1 : vector<128x128xf32>
    %29 = arith.addf %26, %28 : vector<128x128xf32>
    %30 = arith.truncf %29 : vector<128x128xf32> to vector<128x128xbf16>
    %cst_14 = arith.constant dense<0.000000e+00> : vector<128x128xf32>
    %31 = tpu.matmul %0, %30, %cst_14 {dimension_numbers = #tpu.dot_dimension_numbers<[1], [0], [0], [1], [0, 0, 1, 1], [], []>} : vector<128x128xbf16>, vector<128x128xbf16>, vector<128x128xf32> -> vector<128x128xf32>
    %cst_15 = arith.constant 8.500000e-01 : f32
    %32 = vector.broadcast %cst_15 : f32 to vector<128x128xf32>
    %33 = arith.mulf %32, %31 : vector<128x128xf32>
    %cst_16 = arith.constant 1.500000e-01 : f32
    %34 = vector.broadcast %cst_16 : f32 to vector<128x128xf32>
    %35 = arith.mulf %34, %1 : vector<128x128xf32>
    %36 = arith.addf %33, %35 : vector<128x128xf32>
    %c0_17 = arith.constant 0 : index
    %c0_18 = arith.constant 0 : index
    %37 = vector.load %arg2[%c0_17, %c0_18] : memref<128x128xf32, #tpu.memory_space<vmem>>, vector<128x128xf32>
    tpu.vector_store %arg2[%c0_17, %c0_18], %36 {strides = array<i32>} : memref<128x128xf32, #tpu.memory_space<vmem>>, vector<128x128xf32>,
    return
  }
}

</mosaic_0001>

<bundles_post_ra>
// kernel: tpu_custom_call.1
= control target key start
LH: loop header
LB: loop body
LE: loop exit
PB: predicated region body
PF: predicated region fallthrough
CT: control target
= control target key end

     0   :  { %7 = vsyncpa [#allocation4], 0  ;;  %s1033_s0 = inlined_call_operand.hbm [shape: bf16[128,128], index: 0, kind: input, shape index: {}]   ;;  %s1034_s1 = inlined_call_operand.hbm [shape: f32[128,128], index: 1, kind: input, shape index: {}]   ;;  %s1035_s2 = inlined_call_operand.hbm [shape: f32[128,128], index: 2, kind: output, shape index: {}]  }
   0x1   :  { %8 = vsyncpa [#allocation5], 0  ;;  %s13_s11 = sshll.u32 %s1034_s1, 4  ;;  %s766_s12 = smov [#allocation3]   ;;  %s14_s11 = int_to_ptr.hbm [resolvable:$true] %s13_s11 }
   0x2   :  { %s15_s13 = sshll.u32 %s766_s12, 4  ;;  %s767_s14 = smov 128   ;;  %s16_s13 = int_to_ptr.vmem [resolvable:$true] %s15_s13 }
   0x3   :  { %s768_s15 = smov 8  }
   0x4   :  { %21 = dma.hbm_to_vmem [thread:$0]  %s14_s11, 2048, %s16_s13, [#allocation4], %s767_s14, %s767_s14, %s768_s15  }
   0x5   :  { %760 = dma.done.wait [#allocation4], 2048  }
   0x6   :  { %761 = vsyncadd [#allocation4], 4294965248 }
   0x7   :  { %s33_s18 = sshll.u32 %s1033_s0, 4  ;;  %s769_s19 = smov [#allocation2]   ;;  %s34_s18 = int_to_ptr.hbm [resolvable:$true] %s33_s18 }
   0x8   :  { %s35_s20 = sshll.u32 %s769_s19, 4  ;;  %s36_s20 = int_to_ptr.vmem [resolvable:$true] %s35_s20 }
   0x9   :  { %38 = dma.hbm_to_vmem [thread:$0]  %s34_s18, 1024, %s36_s20, [#allocation7] }
   0xa   :  { %762 = dma.done.wait [#allocation7], 1024 }
   0xb   :  { %763 = vsyncadd [#allocation7], 4294966272  ;;  %v795_v0 = vld [vmem:[#allocation3 + $0x70] sm:$0xff]  ;;  %v797_v1 = vld [vmem:[#allocation3 + $0x78] sm:$0xff]  ;;  %s770_s0 = smov [#allocation6]   ;;  %s606_s23 = sshll.u32 %s1035_s2, 4  ;;  %s607_s23 = int_to_ptr.hbm [resolvable:$true] %s606_s23 }
   0xc   :  { %v799_v2 = vld [vmem:[#allocation3 + $0x60] sm:$0xff]  ;;  %v82_v3 = vpack.c.bf16 %v797_v1, %v795_v0  ;;  %v803_v4 = vld [vmem:[#allocation3 + $0x68] sm:$0xff]  ;;  %v807_v6 = vld [vmem:[#allocation3 + $0x50] sm:$0xff]  ;;  %v868_v42 = vmul.f32 0.15, %v795_v0  ;;  %s604_s1 = sshll.u32 %s770_s0, 4  ;;  %s605_s1 = int_to_ptr.vmem [resolvable:$true] %s604_s1 }
   0xd   :  { %v81_v5 = vpack.c.bf16 %v803_v4, %v799_v2  ;;  %v809_v7 = vld [vmem:[#allocation3 + $0x58] sm:$0xff]  ;;  %v813_v9 = vld [vmem:[#allocation3 + $0x40] sm:$0xff]  ;;  %v815_v10 = vld [vmem:[#allocation3 + $0x48] sm:$0xff]  ;;  %v871_v43 = vmul.f32 0.15, %v797_v1 }
   0xe   :  { %660 = vmatpush.bf16.msra.mxu2 %v82_v3  ;;  %661 = vmatpush.bf16.msra.mxu3 %v82_v3  ;;  %v80_v8 = vpack.c.bf16 %v809_v7, %v807_v6  ;;  %v79_v11 = vpack.c.bf16 %v815_v10, %v813_v9  ;;  %v819_v12 = vld [vmem:[#allocation3 + $0x30] sm:$0xff]  ;;  %v821_v13 = vld [vmem:[#allocation3 + $0x38] sm:$0xff]  ;;  %v825_v15 = vld [vmem:[#allocation3 + $0x20] sm:$0xff]  ;;  %v874_v47 = vmul.f32 0.15, %v803_v4 }
   0xf   :  { %659 = vmatpush.bf16.msra.mxu1 %v82_v3  ;;  %131 = vmatpush.bf16.msra.mxu0 %v82_v3  ;;  %v78_v14 = vpack.c.bf16 %v821_v13, %v819_v12  ;;  %v827_v16 = vld [vmem:[#allocation3 + $0x28] sm:$0xff]  ;;  %v831_v18 = vld [vmem:[#allocation3 + $0x10] sm:$0xff]  ;;  %v833_v19 = vld [vmem:[#allocation3 + $0x18] sm:$0xff]  ;;  %v877_v51 = vmul.f32 0.15, %v799_v2 }
  0x10   :  { %v77_v17 = vpack.c.bf16 %v827_v16, %v825_v15  ;;  %v76_v20 = vpack.c.bf16 %v833_v19, %v831_v18  ;;  %v837_v21 = vld [vmem:[#allocation3] sm:$0xff]  ;;  %v839_v22 = vld [vmem:[#allocation3 + $0x8] sm:$0xff]  ;;  %v845_v25 = vld [vmem:[#allocation2 + $0x30] sm:$0xff]  ;;  %v882_v55 = vmul.f32 0.15, %v807_v6 }
  0x11   :  { %v75_v23 = vpack.c.bf16 %v839_v22, %v837_v21  ;;  %v843_v24 = vld [vmem:[#allocation2 + $0x20] sm:$0xff]  ;;  %v847_v26 = vld [vmem:[#allocation2 + $0x10] sm:$0xff]  ;;  %v855_v28 = vld [vmem:[#allocation2 + $0x28] sm:$0xff]  ;;  %v885_v56 = vmul.f32 0.15, %v809_v7 }
  0x12   :  { %663 = vmatpush.bf16.msra.mxu2 %v81_v5  ;;  %664 = vmatpush.bf16.msra.mxu3 %v81_v5  ;;  %v849_v27 = vld [vmem:[#allocation2] sm:$0xff]  ;;  %v857_v29 = vld [vmem:[#allocation2 + $0x38] sm:$0xff]  ;;  %v861_v31 = vld [vmem:[#allocation2 + $0x8] sm:$0xff]  ;;  %v890_v62 = vmul.f32 0.15, %v813_v9 }
  0x13   :  { %662 = vmatpush.bf16.msra.mxu1 %v81_v5  ;;  %132 = vmatpush.bf16.msra.mxu0 %v81_v5  ;;  %v859_v30 = vld [vmem:[#allocation2 + $0x18] sm:$0xff]  ;;  %v893_v63 = vmul.f32 0.15, %v815_v10  ;;  %v898_v7 = vmul.f32 0.15, %v819_v12 }
  0x16   :  { %666 = vmatpush.bf16.msra.mxu2 %v80_v8  ;;  %667 = vmatpush.bf16.msra.mxu3 %v80_v8 }
  0x17   :  { %665 = vmatpush.bf16.msra.mxu1 %v80_v8  ;;  %133 = vmatpush.bf16.msra.mxu0 %v80_v8  ;;  %v901_v8 = vmul.f32 0.15, %v821_v13 }
  0x1a   :  { %669 = vmatpush.bf16.msra.mxu2 %v79_v11  ;;  %670 = vmatpush.bf16.msra.mxu3 %v79_v11 }
  0x1b   :  { %668 = vmatpush.bf16.msra.mxu1 %v79_v11  ;;  %134 = vmatpush.bf16.msra.mxu0 %v79_v11 }
  0x1e   :  { %672 = vmatpush.bf16.msra.mxu2 %v78_v14  ;;  %673 = vmatpush.bf16.msra.mxu3 %v78_v14 }
  0x1f   :  { %671 = vmatpush.bf16.msra.mxu1 %v78_v14  ;;  %135 = vmatpush.bf16.msra.mxu0 %v78_v14 }
  0x22   :  { %675 = vmatpush.bf16.msra.mxu2 %v77_v17  ;;  %676 = vmatpush.bf16.msra.mxu3 %v77_v17 }
  0x23   :  { %674 = vmatpush.bf16.msra.mxu1 %v77_v17  ;;  %136 = vmatpush.bf16.msra.mxu0 %v77_v17 }
  0x26   :  { %678 = vmatpush.bf16.msra.mxu2 %v76_v20  ;;  %679 = vmatpush.bf16.msra.mxu3 %v76_v20 }
  0x27   :  { %677 = vmatpush.bf16.msra.mxu1 %v76_v20  ;;  %137 = vmatpush.bf16.msra.mxu0 %v76_v20  ;;  %v906_v20 = vmul.f32 0.15, %v825_v15 }
  0x2a   :  { %681 = vmatpush.bf16.msra.mxu2 %v75_v23  ;;  %682 = vmatpush.bf16.msra.mxu3 %v75_v23 }
  0x2b   :  { %680 = vmatpush.bf16.msra.mxu1 %v75_v23  ;;  %138 = vmatpush.bf16.msra.mxu0 %v75_v23  ;;  %v909_v23 = vmul.f32 0.15, %v827_v16 }
  0x2d   :  { %159 = vmatmul.bf16.vlgmr.msra.gmra.mxu2 %v843_v24  ;;  %169 = vmatmul.bf16.vlgmr.msra.gmra.mxu3 %v845_v25 }
  0x2e   :  { %149 = vmatmul.bf16.vlgmr.msra.gmra.mxu1 %v847_v26  ;;  %139 = vmatmul.bf16.vlgmr.msra.gmra.mxu0 %v849_v27 }
  0x3d   :  { %164 = vmatmul.bf16.gmra.mxu2 %v855_v28  ;;  %174 = vmatmul.bf16.gmra.mxu3 %v857_v29 }
  0x3e   :  { %154 = vmatmul.bf16.gmra.mxu1 %v859_v30  ;;  %144 = vmatmul.bf16.gmra.mxu0 %v861_v31 }
  0xab   :  { %v150_v34 = vpop.f32.mrf.mxu1  ;;  %v140_v37 = vpop.f32.mrf.mxu0 }
  0xb0   :  { %v160_v32 = vpop.f32.mrf.mxu2  ;;  %v170_v33 = vpop.f32.mrf.mxu3 }
  0xb1   :  { %v192_v52 = vmul.f32 0.85, %v170_v33  ;;  %v188_v0 = vmul.f32 0.85, %v160_v32  ;;  %v184_v32 = vmul.f32 0.85, %v150_v34 }
  0xb3   :  { %v152_v38 = vpop.f32.mrf.mxu1  ;;  %v142_v41 = vpop.f32.mrf.mxu0  ;;  %v224_v61 = vadd.f32 %v877_v51, %v192_v52  ;;  %v220_v9 = vadd.f32 %v890_v62, %v188_v0  ;;  %v216_v15 = vadd.f32 %v906_v20, %v184_v32 }
  0xb4   :  { %v185_v12 = vmul.f32 0.85, %v152_v38 }
  0xb6   :  { %v217_v16 = vadd.f32 %v909_v23, %v185_v12 }
  0xb8   :  { %v162_v35 = vpop.f32.mrf.mxu2  ;;  %v172_v36 = vpop.f32.mrf.mxu3 }
  0xb9   :  { %v193_v48 = vmul.f32 0.85, %v172_v36  ;;  %v189_v2 = vmul.f32 0.85, %v162_v35 }
  0xbb   :  { %v155_v45 = vpop.f32.mrf.mxu1  ;;  %v225_v57 = vadd.f32 %v874_v47, %v193_v48  ;;  %v145_v1 = vpop.f32.mrf.mxu0  ;;  %v221_v10 = vadd.f32 %v893_v63, %v189_v2  ;;  %v180_v48 = vmul.f32 0.85, %v140_v37 }
  0xbc   :  { %v186_v11 = vmul.f32 0.85, %v155_v45  ;;  %v922_v45 = vmul.f32 0.15, %v837_v21 }
  0xbd   :  { %v234_v5 = vpack.c.bf16 %v225_v57, %v224_v61  ;;  %v232_v35 = vpack.c.bf16 %v221_v10, %v220_v9 }
  0xbe   :  { %v218_v33 = vadd.f32 %v898_v7, %v186_v11  ;;  %v212_v52 = vadd.f32 %v922_v45, %v180_v48 }
  0xc0   :  { %v165_v39 = vpop.f32.mrf.mxu2  ;;  %v175_v40 = vpop.f32.mrf.mxu3 }
  0xc1   :  { %v194_v44 = vmul.f32 0.85, %v175_v40  ;;  %v190_v58 = vmul.f32 0.85, %v165_v39  ;;  %v914_v39 = vmul.f32 0.15, %v831_v18 }
  0xc2   :  { %v917_v40 = vmul.f32 0.15, %v833_v19  ;;  %v181_v18 = vmul.f32 0.85, %v142_v41 }
  0xc3   :  { %v226_v53 = vadd.f32 %v868_v42, %v194_v44  ;;  %v222_v3 = vadd.f32 %v882_v55, %v190_v58  ;;  %v157_v6 = vpop.f32.mrf.mxu1  ;;  %v147_v36 = vpop.f32.mrf.mxu0  ;;  %v182_v44 = vmul.f32 0.85, %v145_v1 }
  0xc4   :  { %v187_v14 = vmul.f32 0.85, %v157_v6  ;;  %v183_v34 = vmul.f32 0.85, %v147_v36 }
  0xc6   :  { %v219_v13 = vadd.f32 %v901_v8, %v187_v14  ;;  %v215_v19 = vadd.f32 %v917_v40, %v183_v34 }
  0xc8   :  { %v177_v46 = vpop.f32.mrf.mxu3  ;;  %v167_v50 = vpop.f32.mrf.mxu2  ;;  %v231_v38 = vpack.c.bf16 %v219_v13, %v218_v33 }
  0xc9   :  { %v195_v49 = vmul.f32 0.85, %v177_v46  ;;  %v191_v59 = vmul.f32 0.85, %v167_v50  ;;  %v925_v46 = vmul.f32 0.15, %v839_v22  ;;  %v230_v50 = vpack.c.bf16 %v217_v16, %v216_v15 }
  0xcb   :  { %v227_v54 = vadd.f32 %v871_v43, %v195_v49  ;;  %v223_v4 = vadd.f32 %v885_v56, %v191_v59  ;;  %v214_v49 = vadd.f32 %v914_v39, %v182_v44 }
  0xcd   :  { %v235_v60 = vpack.c.bf16 %v227_v54, %v226_v53  ;;  %v233_v17 = vpack.c.bf16 %v223_v4, %v222_v3  ;;  %v213_v53 = vadd.f32 %v925_v46, %v181_v18  ;;  %v229_v54 = vpack.c.bf16 %v215_v19, %v214_v49 }
  0xcf   :  { %236 = vmatpush.bf16.msrb.mxu1 %v235_v60  ;;  %v228_v57 = vpack.c.bf16 %v213_v53, %v212_v52 }
  0xd3   :  { %237 = vmatpush.bf16.msrb.mxu1 %v234_v5 }
  0xd7   :  { %238 = vmatpush.bf16.msrb.mxu1 %v233_v17 }
  0xdb   :  { %239 = vmatpush.bf16.msrb.mxu1 %v232_v35 }
  0xdf   :  { %240 = vmatpush.bf16.msrb.mxu1 %v231_v38 }
  0xe3   :  { %241 = vmatpush.bf16.msrb.mxu1 %v230_v50 }
  0xe7   :  { %242 = vmatpush.bf16.msrb.mxu1 %v229_v54 }
  0xeb   :  { %243 = vmatpush.bf16.msrb.mxu1 %v228_v57 }
  0xee   :  { %244 = vmatmul.bf16.vlgmr.msrb.gmra.mxu1 %v849_v27 }
  0xfe   :  { %249 = vmatmul.bf16.gmra.mxu1 %v861_v31 }
 0x10e   :  { %254 = vmatmul.bf16.gmra.mxu1 %v847_v26 }
 0x11e   :  { %259 = vmatmul.bf16.gmra.mxu1 %v859_v30 }
 0x12e   :  { %264 = vmatmul.bf16.gmra.mxu1 %v843_v24 }
 0x13e   :  { %269 = vmatmul.bf16.gmra.mxu1 %v855_v28 }
 0x14e   :  { %274 = vmatmul.bf16.gmra.mxu1 %v845_v25 }
 0x15e   :  { %279 = vmatmul.bf16.gmra.mxu1 %v857_v29 }
 0x16b   :  { %v245_v21 = vpop.f32.mrf.mxu1 }
 0x16c   :  { %v285_v22 = vmul.f32 0.85, %v245_v21 }
 0x16e   :  { %v301_v58 = vadd.f32 %v285_v22, %v922_v45 }
 0x173   :  { %v247_v37 = vpop.f32.mrf.mxu1 }
 0x174   :  { %v286_v41 = vmul.f32 0.85, %v247_v37 }
 0x176   :  { %v302_v59 = vadd.f32 %v286_v41, %v925_v46 }
 0x178   :  { %v317_v60 = vpack.c.bf16 %v302_v59, %v301_v58 }
 0x17b   :  { %v250_v61 = vpop.f32.mrf.mxu1 }
 0x17c   :  { %v287_v0 = vmul.f32 0.85, %v250_v61 }
 0x17e   :  { %v303_v3 = vadd.f32 %v287_v0, %v914_v39 }
 0x183   :  { %v252_v1 = vpop.f32.mrf.mxu1 }
 0x184   :  { %v288_v2 = vmul.f32 0.85, %v252_v1 }
 0x186   :  { %v304_v4 = vadd.f32 %v288_v2, %v917_v40 }
 0x188   :  { %v318_v5 = vpack.c.bf16 %v304_v4, %v303_v3 }
 0x18b   :  { %v255_v6 = vpop.f32.mrf.mxu1 }
 0x18c   :  { %v289_v9 = vmul.f32 0.85, %v255_v6 }
 0x18e   :  { %v305_v14 = vadd.f32 %v289_v9, %v906_v20 }
 0x193   :  { %v257_v10 = vpop.f32.mrf.mxu1 }
 0x194   :  { %v290_v11 = vmul.f32 0.85, %v257_v10 }
 0x196   :  { %v306_v17 = vadd.f32 %v290_v11, %v909_v23 }
 0x198   :  { %v319_v32 = vpack.c.bf16 %v306_v17, %v305_v14 }
 0x19b   :  { %v260_v12 = vpop.f32.mrf.mxu1 }
 0x19c   :  { %v291_v33 = vmul.f32 0.85, %v260_v12 }
 0x19e   :  { %v307_v36 = vadd.f32 %v291_v33, %v898_v7 }
 0x1a3   :  { %v262_v13 = vpop.f32.mrf.mxu1 }
 0x1a4   :  { %v292_v35 = vmul.f32 0.85, %v262_v13 }
 0x1a6   :  { %v308_v15 = vadd.f32 %v292_v35, %v901_v8 }
 0x1a8   :  { %v320_v16 = vpack.c.bf16 %v308_v15, %v307_v36 }
 0x1ab   :  { %v265_v44 = vpop.f32.mrf.mxu1 }
 0x1ac   :  { %v293_v3 = vmul.f32 0.85, %v265_v44 }
 0x1ae   :  { %v309_v10 = vadd.f32 %v293_v3, %v890_v62 }
 0x1b3   :  { %v267_v34 = vpop.f32.mrf.mxu1 }
 0x1b4   :  { %v294_v0 = vmul.f32 0.85, %v267_v34 }
 0x1b6   :  { %v310_v6 = vadd.f32 %v294_v0, %v893_v63 }
 0x1b8   :  { %v321_v11 = vpack.c.bf16 %v310_v6, %v309_v10 }
 0x1bb   :  { %v270_v38 = vpop.f32.mrf.mxu1 }
 0x1bc   :  { %v295_v59 = vmul.f32 0.85, %v270_v38 }
 0x1be   :  { %v311_v4 = vadd.f32 %v295_v59, %v882_v55 }
 0x1c3   :  { %v272_v48 = vpop.f32.mrf.mxu1 }
 0x1c4   :  { %v296_v37 = vmul.f32 0.85, %v272_v48 }
 0x1c6   :  { %v312_v1 = vadd.f32 %v296_v37, %v885_v56 }
 0x1c8   :  { %v322_v9 = vpack.c.bf16 %v312_v1, %v311_v4 }
 0x1cb   :  { %v275_v18 = vpop.f32.mrf.mxu1 }
 0x1cc   :  { %v297_v57 = vmul.f32 0.85, %v275_v18 }
 0x1ce   :  { %v313_v61 = vadd.f32 %v297_v57, %v877_v51 }
 0x1d3   :  { %v277_v49 = vpop.f32.mrf.mxu1 }
 0x1d4   :  { %v298_v53 = vmul.f32 0.85, %v277_v49 }
 0x1d6   :  { %v314_v41 = vadd.f32 %v298_v53, %v874_v47 }
 0x1d8   :  { %v323_v2 = vpack.c.bf16 %v314_v41, %v313_v61 }
 0x1db   :  { %v280_v19 = vpop.f32.mrf.mxu1 }
 0x1dc   :  { %v299_v50 = vmul.f32 0.85, %v280_v19 }
 0x1de   :  { %v315_v21 = vadd.f32 %v299_v50, %v868_v42 }
 0x1e3   :  { %v282_v52 = vpop.f32.mrf.mxu1 }
 0x1e4   :  { %v300_v54 = vmul.f32 0.85, %v282_v52 }
 0x1e6   :  { %v316_v22 = vadd.f32 %v300_v54, %v871_v43 }
 0x1e8   :  { %v324_v58 = vpack.c.bf16 %v316_v22, %v315_v21 }
 0x1ea   :  { %325 = vmatpush.bf16.msrb.mxu2 %v324_v58 }
 0x1ee   :  { %326 = vmatpush.bf16.msrb.mxu2 %v323_v2 }
 0x1f2   :  { %327 = vmatpush.bf16.msrb.mxu2 %v322_v9 }
 0x1f6   :  { %328 = vmatpush.bf16.msrb.mxu2 %v321_v11 }
 0x1fa   :  { %329 = vmatpush.bf16.msrb.mxu2 %v320_v16 }
 0x1fe   :  { %330 = vmatpush.bf16.msrb.mxu2 %v319_v32 }
 0x202   :  { %331 = vmatpush.bf16.msrb.mxu2 %v318_v5 }
 0x206   :  { %332 = vmatpush.bf16.msrb.mxu2 %v317_v60 }
 0x209   :  { %333 = vmatmul.bf16.vlgmr.msrb.gmra.mxu2 %v849_v27 }
 0x219   :  { %338 = vmatmul.bf16.gmra.mxu2 %v861_v31 }
 0x229   :  { %343 = vmatmul.bf16.gmra.mxu2 %v847_v26 }
 0x239   :  { %348 = vmatmul.bf16.gmra.mxu2 %v859_v30 }
 0x249   :  { %353 = vmatmul.bf16.gmra.mxu2 %v843_v24 }
 0x259   :  { %358 = vmatmul.bf16.gmra.mxu2 %v855_v28 }
 0x269   :  { %363 = vmatmul.bf16.gmra.mxu2 %v845_v25 }
 0x279   :  { %368 = vmatmul.bf16.gmra.mxu2 %v857_v29 }
 0x28c   :  { %v334_v14 = vpop.f32.mrf.mxu2 }
 0x28d   :  { %v374_v17 = vmul.f32 0.85, %v334_v14 }
 0x28f   :  { %v390_v32 = vadd.f32 %v374_v17, %v922_v45 }
 0x294   :  { %v336_v5 = vpop.f32.mrf.mxu2 }
 0x295   :  { %v375_v60 = vmul.f32 0.85, %v336_v5 }
 0x297   :  { %v391_v12 = vadd.f32 %v375_v60, %v925_v46 }
 0x299   :  { %v406_v33 = vpack.c.bf16 %v391_v12, %v390_v32 }
 0x29c   :  { %v339_v13 = vpop.f32.mrf.mxu2 }
 0x29d   :  { %v376_v35 = vmul.f32 0.85, %v339_v13 }
 0x29f   :  { %v392_v16 = vadd.f32 %v376_v35, %v914_v39 }
 0x2a4   :  { %v341_v36 = vpop.f32.mrf.mxu2 }
 0x2a5   :  { %v377_v15 = vmul.f32 0.85, %v341_v36 }
 0x2a7   :  { %v393_v44 = vadd.f32 %v377_v15, %v917_v40 }
 0x2a9   :  { %v407_v34 = vpack.c.bf16 %v393_v44, %v392_v16 }
 0x2ac   :  { %v344_v38 = vpop.f32.mrf.mxu2 }
 0x2ad   :  { %v378_v48 = vmul.f32 0.85, %v344_v38 }
 0x2af   :  { %v394_v19 = vadd.f32 %v378_v48, %v906_v20 }
 0x2b4   :  { %v346_v18 = vpop.f32.mrf.mxu2 }
 0x2b5   :  { %v379_v49 = vmul.f32 0.85, %v346_v18 }
 0x2b7   :  { %v395_v50 = vadd.f32 %v379_v49, %v909_v23 }
 0x2b9   :  { %v408_v52 = vpack.c.bf16 %v395_v50, %v394_v19 }
 0x2bc   :  { %v349_v53 = vpop.f32.mrf.mxu2 }
 0x2bd   :  { %v380_v54 = vmul.f32 0.85, %v349_v53 }
 0x2bf   :  { %v396_v22 = vadd.f32 %v380_v54, %v898_v7 }
 0x2c4   :  { %v351_v57 = vpop.f32.mrf.mxu2 }
 0x2c5   :  { %v381_v21 = vmul.f32 0.85, %v351_v57 }
 0x2c7   :  { %v397_v37 = vadd.f32 %v381_v21, %v901_v8 }
 0x2c9   :  { %v409_v41 = vpack.c.bf16 %v397_v37, %v396_v22 }
 0x2cc   :  { %v354_v58 = vpop.f32.mrf.mxu2 }
 0x2cd   :  { %v382_v16 = vmul.f32 0.85, %v354_v58 }
 0x2cf   :  { %v398_v18 = vadd.f32 %v382_v16, %v890_v62 }
 0x2d4   :  { %v356_v59 = vpop.f32.mrf.mxu2 }
 0x2d5   :  { %v383_v35 = vmul.f32 0.85, %v356_v59 }
 0x2d7   :  { %v399_v38 = vadd.f32 %v383_v35, %v893_v63 }
 0x2d9   :  { %v410_v49 = vpack.c.bf16 %v399_v38, %v398_v18 }
 0x2dc   :  { %v359_v61 = vpop.f32.mrf.mxu2 }
 0x2dd   :  { %v384_v12 = vmul.f32 0.85, %v359_v61 }
 0x2df   :  { %v400_v44 = vadd.f32 %v384_v12, %v882_v55 }
 0x2e4   :  { %v361_v0 = vpop.f32.mrf.mxu2 }
 0x2e5   :  { %v385_v5 = vmul.f32 0.85, %v361_v0 }
 0x2e7   :  { %v401_v36 = vadd.f32 %v385_v5, %v885_v56 }
 0x2e9   :  { %v411_v48 = vpack.c.bf16 %v401_v36, %v400_v44 }
 0x2ec   :  { %v364_v1 = vpop.f32.mrf.mxu2 }
 0x2ed   :  { %v386_v11 = vmul.f32 0.85, %v364_v1 }
 0x2ef   :  { %v402_v13 = vadd.f32 %v386_v11, %v877_v51 }
 0x2f4   :  { %v366_v2 = vpop.f32.mrf.mxu2 }
 0x2f5   :  { %v387_v9 = vmul.f32 0.85, %v366_v2 }
 0x2f7   :  { %v403_v60 = vadd.f32 %v387_v9, %v874_v47 }
 0x2f9   :  { %v412_v15 = vpack.c.bf16 %v403_v60, %v402_v13 }
 0x2fc   :  { %v369_v3 = vpop.f32.mrf.mxu2 }
 0x2fd   :  { %v388_v4 = vmul.f32 0.85, %v369_v3 }
 0x2ff   :  { %v404_v14 = vadd.f32 %v388_v4, %v868_v42 }
 0x304   :  { %v371_v6 = vpop.f32.mrf.mxu2 }
 0x305   :  { %v389_v10 = vmul.f32 0.85, %v371_v6 }
 0x307   :  { %v405_v17 = vadd.f32 %v389_v10, %v871_v43 }
 0x309   :  { %v413_v32 = vpack.c.bf16 %v405_v17, %v404_v14 }
 0x30b   :  { %414 = vmatpush.bf16.msrb.mxu3 %v413_v32 }
 0x30f   :  { %415 = vmatpush.bf16.msrb.mxu3 %v412_v15 }
 0x313   :  { %416 = vmatpush.bf16.msrb.mxu3 %v411_v48 }
 0x317   :  { %417 = vmatpush.bf16.msrb.mxu3 %v410_v49 }
 0x31b   :  { %418 = vmatpush.bf16.msrb.mxu3 %v409_v41 }
 0x31f   :  { %419 = vmatpush.bf16.msrb.mxu3 %v408_v52 }
 0x323   :  { %420 = vmatpush.bf16.msrb.mxu3 %v407_v34 }
 0x327   :  { %421 = vmatpush.bf16.msrb.mxu3 %v406_v33 }
 0x32a   :  { %422 = vmatmul.bf16.vlgmr.msrb.gmra.mxu3 %v849_v27 }
 0x33a   :  { %427 = vmatmul.bf16.gmra.mxu3 %v861_v31 }
 0x34a   :  { %432 = vmatmul.bf16.gmra.mxu3 %v847_v26 }
 0x35a   :  { %437 = vmatmul.bf16.gmra.mxu3 %v859_v30 }
 0x36a   :  { %442 = vmatmul.bf16.gmra.mxu3 %v843_v24 }
 0x37a   :  { %447 = vmatmul.bf16.gmra.mxu3 %v855_v28 }
 0x38a   :  { %452 = vmatmul.bf16.gmra.mxu3 %v845_v25 }
 0x39a   :  { %457 = vmatmul.bf16.gmra.mxu3 %v857_v29 }
 0x3ad   :  { %v423_v19 = vpop.f32.mrf.mxu3 }
 0x3ae   :  { %v463_v50 = vmul.f32 0.85, %v423_v19 }
 0x3b0   :  { %v479_v52 = vadd.f32 %v463_v50, %v922_v45 }
 0x3b5   :  { %v425_v34 = vpop.f32.mrf.mxu3 }
 0x3b6   :  { %v464_v33 = vmul.f32 0.85, %v425_v34 }
 0x3b8   :  { %v480_v53 = vadd.f32 %v464_v33, %v925_v46 }
 0x3ba   :  { %v495_v54 = vpack.c.bf16 %v480_v53, %v479_v52 }
 0x3bd   :  { %v428_v57 = vpop.f32.mrf.mxu3 }
 0x3be   :  { %v465_v21 = vmul.f32 0.85, %v428_v57 }
 0x3c0   :  { %v481_v41 = vadd.f32 %v465_v21, %v914_v39 }
 0x3c5   :  { %v430_v22 = vpop.f32.mrf.mxu3 }
 0x3c6   :  { %v466_v37 = vmul.f32 0.85, %v430_v22 }
 0x3c8   :  { %v482_v58 = vadd.f32 %v466_v37, %v917_v40 }
 0x3ca   :  { %v496_v59 = vpack.c.bf16 %v482_v58, %v481_v41 }
 0x3cd   :  { %v433_v61 = vpop.f32.mrf.mxu3 }
 0x3ce   :  { %v467_v0 = vmul.f32 0.85, %v433_v61 }
 0x3d0   :  { %v483_v3 = vadd.f32 %v467_v0, %v906_v20 }
 0x3d5   :  { %v435_v1 = vpop.f32.mrf.mxu3 }
 0x3d6   :  { %v468_v2 = vmul.f32 0.85, %v435_v1 }
 0x3d8   :  { %v484_v4 = vadd.f32 %v468_v2, %v909_v23 }
 0x3da   :  { %v497_v6 = vpack.c.bf16 %v484_v4, %v483_v3 }
 0x3dd   :  { %v438_v9 = vpop.f32.mrf.mxu3 }
 0x3de   :  { %v469_v10 = vmul.f32 0.85, %v438_v9 }
 0x3e0   :  { %v485_v17 = vadd.f32 %v469_v10, %v898_v7 }
 0x3e5   :  { %v440_v11 = vpop.f32.mrf.mxu3 }
 0x3e6   :  { %v470_v14 = vmul.f32 0.85, %v440_v11 }
 0x3e8   :  { %v486_v5 = vadd.f32 %v470_v14, %v901_v8 }
 0x3ea   :  { %v498_v60 = vpack.c.bf16 %v486_v5, %v485_v17 }
 0x3ed   :  { %v443_v32 = vpop.f32.mrf.mxu3 }
 0x3ee   :  { %v471_v41 = vmul.f32 0.85, %v443_v32 }
 0x3f0   :  { %v487_v1 = vadd.f32 %v471_v41, %v890_v62 }
 0x3f5   :  { %v445_v12 = vpop.f32.mrf.mxu3 }
 0x3f6   :  { %v472_v21 = vmul.f32 0.85, %v445_v12 }
 0x3f8   :  { %v488_v61 = vadd.f32 %v472_v21, %v893_v63 }
 0x3fa   :  { %v499_v2 = vpack.c.bf16 %v488_v61, %v487_v1 }
 0x3fd   :  { %v448_v13 = vpop.f32.mrf.mxu3 }
 0x3fe   :  { %v473_v53 = vmul.f32 0.85, %v448_v13 }
 0x400   :  { %v489_v58 = vadd.f32 %v473_v53, %v882_v55 }
 0x405   :  { %v450_v35 = vpop.f32.mrf.mxu3 }
 0x406   :  { %v474_v34 = vmul.f32 0.85, %v450_v35 }
 0x408   :  { %v490_v22 = vadd.f32 %v474_v34, %v885_v56 }
 0x40a   :  { %v500_v0 = vpack.c.bf16 %v490_v22, %v489_v58 }
 0x40d   :  { %v453_v36 = vpop.f32.mrf.mxu3 }
 0x40e   :  { %v475_v49 = vmul.f32 0.85, %v453_v36 }
 0x410   :  { %v491_v57 = vadd.f32 %v475_v49, %v877_v51 }
 0x415   :  { %v455_v15 = vpop.f32.mrf.mxu3 }
 0x416   :  { %v476_v48 = vmul.f32 0.85, %v455_v15 }
 0x418   :  { %v492_v33 = vadd.f32 %v476_v48, %v874_v47 }
 0x41a   :  { %v501_v37 = vpack.c.bf16 %v492_v33, %v491_v57 }
 0x41d   :  { %v458_v16 = vpop.f32.mrf.mxu3 }
 0x41e   :  { %v477_v44 = vmul.f32 0.85, %v458_v16 }
 0x420   :  { %v493_v19 = vadd.f32 %v477_v44, %v868_v42 }
 0x425   :  { %v460_v38 = vpop.f32.mrf.mxu3 }
 0x426   :  { %v478_v18 = vmul.f32 0.85, %v460_v38 }
 0x428   :  { %v494_v50 = vadd.f32 %v478_v18, %v871_v43 }
 0x42a   :  { %v502_v52 = vpack.c.bf16 %v494_v50, %v493_v19 }
 0x42c   :  { %503 = vmatpush.bf16.msrb.mxu0 %v502_v52 }
 0x430   :  { %504 = vmatpush.bf16.msrb.mxu0 %v501_v37 }
 0x434   :  { %505 = vmatpush.bf16.msrb.mxu0 %v500_v0 }
 0x438   :  { %506 = vmatpush.bf16.msrb.mxu0 %v499_v2 }
 0x43c   :  { %507 = vmatpush.bf16.msrb.mxu0 %v498_v60 }
 0x440   :  { %508 = vmatpush.bf16.msrb.mxu0 %v497_v6 }
 0x444   :  { %509 = vmatpush.bf16.msrb.mxu0 %v496_v59 }
 0x448   :  { %510 = vmatpush.bf16.msrb.mxu0 %v495_v54 }
 0x44b   :  { %511 = vmatmul.bf16.vlgmr.msrb.gmra.mxu0 %v849_v27 }
 0x45b   :  { %516 = vmatmul.bf16.gmra.mxu0 %v861_v31 }
 0x46b   :  { %521 = vmatmul.bf16.gmra.mxu0 %v847_v26 }
 0x47b   :  { %526 = vmatmul.bf16.gmra.mxu0 %v859_v30 }
 0x48b   :  { %531 = vmatmul.bf16.gmra.mxu0 %v843_v24 }
 0x49b   :  { %536 = vmatmul.bf16.gmra.mxu0 %v855_v28 }
 0x4ab   :  { %541 = vmatmul.bf16.gmra.mxu0 %v845_v25 }
 0x4bb   :  { %546 = vmatmul.bf16.gmra.mxu0 %v857_v29 }
 0x4c8   :  { %v512_v3 = vpop.f32.mrf.mxu0 }
 0x4c9   :  { %v552_v4 = vmul.f32 0.85, %v512_v3 }
 0x4cb   :  { %v568_v54 = vadd.f32 %v552_v4, %v922_v45 }
 0x4cd   :  { %584 = vst [vmem:[#allocation6] sm:$0xff] %v568_v54 }
 0x4d0   :  { %v514_v27 = vpop.f32.mrf.mxu0 }
 0x4d1   :  { %v553_v59 = vmul.f32 0.85, %v514_v27 }
 0x4d3   :  { %v569_v31 = vadd.f32 %v553_v59, %v925_v46 }
 0x4d5   :  { %585 = vst [vmem:[#allocation6 + $0x8] sm:$0xff] %v569_v31 }
 0x4d8   :  { %v517_v26 = vpop.f32.mrf.mxu0 }
 0x4d9   :  { %v554_v30 = vmul.f32 0.85, %v517_v26 }
 0x4db   :  { %v570_v24 = vadd.f32 %v554_v30, %v914_v39 }
 0x4dd   :  { %586 = vst [vmem:[#allocation6 + $0x10] sm:$0xff] %v570_v24 }
 0x4e0   :  { %v519_v28 = vpop.f32.mrf.mxu0 }
 0x4e1   :  { %v555_v6 = vmul.f32 0.85, %v519_v28 }
 0x4e3   :  { %v571_v25 = vadd.f32 %v555_v6, %v917_v40 }
 0x4e5   :  { %587 = vst [vmem:[#allocation6 + $0x18] sm:$0xff] %v571_v25 }
 0x4e8   :  { %v522_v29 = vpop.f32.mrf.mxu0 }
 0x4e9   :  { %v556_v9 = vmul.f32 0.85, %v522_v29 }
 0x4eb   :  { %v572_v45 = vadd.f32 %v556_v9, %v906_v20 }
 0x4ed   :  { %588 = vst [vmem:[#allocation6 + $0x20] sm:$0xff] %v572_v45 }
 0x4f0   :  { %v524_v10 = vpop.f32.mrf.mxu0 }
 0x4f1   :  { %v557_v11 = vmul.f32 0.85, %v524_v10 }
 0x4f3   :  { %v573_v46 = vadd.f32 %v557_v11, %v909_v23 }
 0x4f5   :  { %589 = vst [vmem:[#allocation6 + $0x28] sm:$0xff] %v573_v46 }
 0x4f8   :  { %v527_v14 = vpop.f32.mrf.mxu0 }
 0x4f9   :  { %v558_v17 = vmul.f32 0.85, %v527_v14 }
 0x4fb   :  { %v574_v39 = vadd.f32 %v558_v17, %v898_v7 }
 0x4fd   :  { %590 = vst [vmem:[#allocation6 + $0x30] sm:$0xff] %v574_v39 }
 0x500   :  { %v529_v5 = vpop.f32.mrf.mxu0 }
 0x501   :  { %v559_v60 = vmul.f32 0.85, %v529_v5 }
 0x503   :  { %v575_v40 = vadd.f32 %v559_v60, %v901_v8 }
 0x505   :  { %591 = vst [vmem:[#allocation6 + $0x38] sm:$0xff] %v575_v40 }
 0x508   :  { %v532_v32 = vpop.f32.mrf.mxu0 }
 0x509   :  { %v560_v12 = vmul.f32 0.85, %v532_v32 }
 0x50b   :  { %v576_v20 = vadd.f32 %v560_v12, %v890_v62 }
 0x50d   :  { %592 = vst [vmem:[#allocation6 + $0x40] sm:$0xff] %v576_v20 }
 0x510   :  { %v534_v13 = vpop.f32.mrf.mxu0 }
 0x511   :  { %v561_v35 = vmul.f32 0.85, %v534_v13 }
 0x513   :  { %v577_v23 = vadd.f32 %v561_v35, %v893_v63 }
 0x515   :  { %593 = vst [vmem:[#allocation6 + $0x48] sm:$0xff] %v577_v23 }
 0x518   :  { %v537_v36 = vpop.f32.mrf.mxu0 }
 0x519   :  { %v562_v15 = vmul.f32 0.85, %v537_v36 }
 0x51b   :  { %v578_v7 = vadd.f32 %v562_v15, %v882_v55 }
 0x51d   :  { %594 = vst [vmem:[#allocation6 + $0x50] sm:$0xff] %v578_v7 }
 0x520   :  { %v539_v16 = vpop.f32.mrf.mxu0 }
 0x521   :  { %v563_v44 = vmul.f32 0.85, %v539_v16 }
 0x523   :  { %v579_v8 = vadd.f32 %v563_v44, %v885_v56 }
 0x525   :  { %595 = vst [vmem:[#allocation6 + $0x58] sm:$0xff] %v579_v8 }
 0x528   :  { %v542_v38 = vpop.f32.mrf.mxu0 }
 0x529   :  { %v564_v48 = vmul.f32 0.85, %v542_v38 }
 0x52b   :  { %v580_v62 = vadd.f32 %v564_v48, %v877_v51 }
 0x52d   :  { %596 = vst [vmem:[#allocation6 + $0x60] sm:$0xff] %v580_v62 }
 0x530   :  { %v544_v18 = vpop.f32.mrf.mxu0 }
 0x531   :  { %v565_v49 = vmul.f32 0.85, %v544_v18 }
 0x533   :  { %v581_v63 = vadd.f32 %v565_v49, %v874_v47 }
 0x535   :  { %597 = vst [vmem:[#allocation6 + $0x68] sm:$0xff] %v581_v63 }
 0x538   :  { %v547_v19 = vpop.f32.mrf.mxu0 }
 0x539   :  { %v566_v50 = vmul.f32 0.85, %v547_v19 }
 0x53b   :  { %v582_v55 = vadd.f32 %v566_v50, %v868_v42 }
 0x53d   :  { %598 = vst [vmem:[#allocation6 + $0x70] sm:$0xff] %v582_v55 }
 0x540   :  { %v549_v34 = vpop.f32.mrf.mxu0 }
 0x541   :  { %v567_v56 = vmul.f32 0.85, %v549_v34 }
 0x543   :  { %v583_v51 = vadd.f32 %v567_v56, %v871_v43 }
 0x545   :  { %599 = vst [vmem:[#allocation6 + $0x78] sm:$0xff] %v583_v51 }
 0x546   :  { %612 = dma.vmem_to_hbm [thread:$0]  %s605_s1, 2048, %s607_s23, [#allocation5], %s767_s14, %s767_s14, %s768_s15  }
 0x547   :  { %764 = dma.done.wait [#allocation5], 2048  }
 0x548   :  { %765 = vsyncadd [#allocation5], 4294965248 }
 0x549   :  { %617 = vsyncpa [#allocation4], 1 }
 0x54a   :  { %618 = vsyncpa [#allocation5], 1 }

</bundles_post_ra>
